<compile_context>
chip_gen: v7x
topology: tpu7x:2x2x1
jax: 0.10.0
libtpu: 0.0.40
codegen_flags: <defaults>
</compile_context>

<pallas_src>
import jax
import jax.numpy as jnp
from jax.experimental import pallas as pl
from jax.experimental.pallas import tpu as pltpu


def _critic_kernel(
    obs_ref, h_ref, mask_ref,
    w1_ref, b1_ref, w2_ref, b2_ref,
    wi_ref, wh_ref, bi_ref, bhn_ref,
    wv_ref, bv_ref,
    v_ref, hout_ref,
):
    H = h_ref.shape[-1]

    # Mask the incoming recurrent state (MAPPO resets hidden state at episode ends).
    h0 = h_ref[...] * mask_ref[...]                      # (TB, H) * (TB, 1), f32

    # --- fc1: MLP(obs_dim, hidden_dim, 2) = 2x (Linear + ReLU); bf16 MXU, f32 accumulate ---
    f = jnp.dot(obs_ref[...].astype(jnp.bfloat16), w1_ref[...],
                preferred_element_type=jnp.float32) + b1_ref[...]
    f = jnp.maximum(f, 0.0)
    f = jnp.dot(f.astype(jnp.bfloat16), w2_ref[...],
                preferred_element_type=jnp.float32) + b2_ref[...]
    f = jnp.maximum(f, 0.0)

    # --- rnn: single-step GRU cell, fused gate matmuls (PyTorch gate order r, z, n) ---
    gi = jnp.dot(f.astype(jnp.bfloat16), wi_ref[...],
                 preferred_element_type=jnp.float32)     # (TB, 3H)
    gh = jnp.dot(h0.astype(jnp.bfloat16), wh_ref[...],
                 preferred_element_type=jnp.float32)     # (TB, 3H)
    b = bi_ref[...]                                      # (1, 3H): [b_ir+b_hr | b_iz+b_hz | b_in]

    r = jax.nn.sigmoid(gi[:, 0:H] + gh[:, 0:H] + b[:, 0:H])
    z = jax.nn.sigmoid(gi[:, H:2 * H] + gh[:, H:2 * H] + b[:, H:2 * H])
    n = jnp.tanh(gi[:, 2 * H:3 * H] + b[:, 2 * H:3 * H]
                 + r * (gh[:, 2 * H:3 * H] + bhn_ref[...]))
    h1 = (1.0 - z) * n + z * h0                          # f32

    # --- v_out: PopArt head = Linear(hidden_dim, 1) at forward time.
    # N=1 matmul wastes the MXU -> VPU multiply + lane reduction instead.
    v = jnp.sum(h1 * wv_ref[...], axis=-1, keepdims=True) + bv_ref[...]

    v_ref[...] = v.astype(v_ref.dtype)
    hout_ref[...] = h1.astype(hout_ref.dtype)


def _pick_batch_tile(B):
    """Largest batch tile that keeps VMEM bounded and satisfies the (8,128) rule."""
    if B <= 512:
        return B                       # block == full batch dim
    for tb in (512, 256, 128, 64, 32, 16, 8):
        if B % tb == 0:
            return tb
    return B                           # ragged batch: fall back to a single block


@jax.jit
def critic_forward(obs, rnn_states, masks, params):
    """obs: (B, obs_dim) f32, rnn_states: (B, H) f32, masks: (B, 1) f32."""
    B, obs_dim = obs.shape
    H = rnn_states.shape[1]
    TB = _pick_batch_tile(B)
    grid = (pl.cdiv(B, TB),)

    weights = (
        params["w1"], params["b1"], params["w2"], params["b2"],
        params["w_i"], params["w_h"], params["b_i"], params["b_hn"],
        params["w_v"], params["b_v"],
    )

    def row_spec(block_shape):          # batch-tiled activations / outputs
        return pl.BlockSpec(block_shape, lambda i: (i, 0))

    def const_spec(shape):              # weights: VMEM-resident across the whole grid
        return pl.BlockSpec(shape, lambda i: (0, 0))

    in_specs = [
        row_spec((TB, obs_dim)),
        row_spec((TB, H)),
        row_spec((TB, 1)),
    ] + [const_spec(w.shape) for w in weights]

    out_shape = (
        jax.ShapeDtypeStruct((B, 1), jnp.float32),   # values
        jax.ShapeDtypeStruct((B, H), jnp.float32),   # new rnn_states
    )
    out_specs = (row_spec((TB, 1)), row_spec((TB, H)))

    values, new_states = pl.pallas_call(
        _critic_kernel,
        out_shape=out_shape,
        grid=grid,
        in_specs=in_specs,
        out_specs=out_specs,
        # state-carrying recurrent kernel: reuse the rnn_states buffer for the new state
        input_output_aliases={1: 1},
        compiler_params=pltpu.CompilerParams(
            dimension_semantics=("parallel",),       # shard batch tiles across TCs on v7x
            vmem_limit_bytes=48 * 1024 * 1024,       # stays under v7x's 64 MiB physical VMEM
        ),
    )(obs, rnn_states, masks, *weights)
    return values, new_states


def init_params(key, obs_dim, hidden_dim):
    """Deterministic synthetic parameters (shapes match the PyTorch module), pre-fused."""
    ks = jax.random.split(key, 16)
    H = hidden_dim

    def w(k, shape, scale=0.1):
        return (scale * jax.random.normal(k, shape)).astype(jnp.float32)

    # Per-gate GRU weights/biases (PyTorch gate order r, z, n), stored (in, out).
    w_ir, w_iz, w_in = w(ks[2], (H, H)), w(ks[3], (H, H)), w(ks[4], (H, H))
    w_hr, w_hz, w_hn = w(ks[5], (H, H)), w(ks[6], (H, H)), w(ks[7], (H, H))
    b_ir, b_iz, b_in = w(ks[8], (1, H), 0.01), w(ks[9], (1, H), 0.01), w(ks[10], (1, H), 0.01)
    b_hr, b_hz, b_hn = w(ks[11], (1, H), 0.01), w(ks[12], (1, H), 0.01), w(ks[13], (1, H), 0.01)

    params = {
        # MLP(obs_dim, hidden_dim, 2); weights in bf16 for the MXU, biases stay f32
        "w1": w(ks[0], (obs_dim, H)).astype(jnp.bfloat16),
        "b1": jnp.zeros((1, H), jnp.float32),
        "w2": w(ks[1], (H, H)).astype(jnp.bfloat16),
        "b2": jnp.zeros((1, H), jnp.float32),
        # Fused GRU weights (H, 3H) and biases: r/z input+hidden biases pre-folded,
        # b_hn kept separate because of the r * (gh_n + b_hn) term.
        "w_i": jnp.concatenate([w_ir, w_iz, w_in], axis=1).astype(jnp.bfloat16),
        "w_h": jnp.concatenate([w_hr, w_hz, w_hn], axis=1).astype(jnp.bfloat16),
        "b_i": jnp.concatenate([b_ir + b_hr, b_iz + b_hz, b_in], axis=1),
        "b_hn": b_hn,
        # PopArt(hidden_dim, 1) -> plain linear at forward time; stored as a (1, H) row
        # so the value head is a VPU multiply + lane reduction instead of an N=1 matmul.
        "w_v": w(ks[14], (1, H)),
        "b_v": jnp.zeros((1, 1), jnp.float32),
    }
    # TODO(synk): PopArt running mean/var update (training-time statistics) has no
    # forward-pass effect here and is not implemented.
    # NOTE: with H=32 the MXU/lane utilization per call is <10%; throughput must come
    # from the batch dimension (or padding H to 128 at the model level).
    return params


def _reference_forward(obs, rnn_states, masks, params):
    """Pure-JAX reference with the same fused/bf16 parameterization."""
    def mm(x, w):
        return jnp.dot(x.astype(jnp.bfloat16), w, preferred_element_type=jnp.float32)

    H = rnn_states.shape[1]
    h0 = rnn_states * masks
    f = jax.nn.relu(mm(obs, params["w1"]) + params["b1"])
    f = jax.nn.relu(mm(f, params["w2"]) + params["b2"])
    gi = mm(f, params["w_i"])
    gh = mm(h0, params["w_h"])
    b = params["b_i"]
    r = jax.nn.sigmoid(gi[:, :H] + gh[:, :H] + b[:, :H])
    z = jax.nn.sigmoid(gi[:, H:2 * H] + gh[:, H:2 * H] + b[:, H:2 * H])
    n = jnp.tanh(gi[:, 2 * H:] + b[:, 2 * H:] + r * (gh[:, 2 * H:] + params["b_hn"]))
    h1 = (1.0 - z) * n + z * h0
    v = jnp.sum(h1 * params["w_v"], axis=-1, keepdims=True) + params["b_v"]
    return v, h1


if __name__ == "__main__":
    key = jax.random.PRNGKey(0)
    k_obs, k_h, k_p = jax.random.split(key, 3)

    B, obs_dim, hidden_dim = 8, 16, 32
    obs = jax.random.normal(k_obs, (B, obs_dim), dtype=jnp.float32)
    rnn_states = jax.random.normal(k_h, (B, hidden_dim), dtype=jnp.float32)
    masks = jnp.ones((B, 1), dtype=jnp.float32).at[0, 0].set(0.0)  # one reset env

    params = init_params(k_p, obs_dim, hidden_dim)

    # Reference computed first (rnn_states buffer is reused for the new state downstream).
    v_ref, h_ref = _reference_forward(obs, rnn_states, masks, params)
    v_ref, h_ref = jax.block_until_ready((v_ref, h_ref))

    values, new_states = critic_forward(obs, rnn_states, masks, params)
    values, new_states = jax.block_until_ready((values, new_states))

    assert values.shape == (B, 1) and new_states.shape == (B, hidden_dim)
    assert float(jnp.max(jnp.abs(values - v_ref))) < 1e-2
    assert float(jnp.max(jnp.abs(new_states - h_ref))) < 1e-2
    print("KERNEL_OK")
</pallas_src>

<mosaic_0001>
module attributes {stable_mosaic.version = 11 : i64} {
  func.func @_critic_kernel(%arg0: i32, %arg1: memref<8x16xf32, #tpu.memory_space<vmem>>, %arg2: memref<8x32xf32, #tpu.memory_space<vmem>>, %arg3: memref<8x1xf32, #tpu.memory_space<vmem>>, %arg4: memref<16x32xbf16, #tpu.memory_space<vmem>>, %arg5: memref<1x32xf32, #tpu.memory_space<vmem>>, %arg6: memref<32x32xbf16, #tpu.memory_space<vmem>>, %arg7: memref<1x32xf32, #tpu.memory_space<vmem>>, %arg8: memref<32x96xbf16, #tpu.memory_space<vmem>>, %arg9: memref<32x96xbf16, #tpu.memory_space<vmem>>, %arg10: memref<1x96xf32, #tpu.memory_space<vmem>>, %arg11: memref<1x32xf32, #tpu.memory_space<vmem>>, %arg12: memref<1x32xf32, #tpu.memory_space<vmem>>, %arg13: memref<1x1xf32, #tpu.memory_space<vmem>>, %arg14: memref<8x1xf32, #tpu.memory_space<vmem>>, %arg15: memref<8x32xf32, #tpu.memory_space<vmem>>) attributes {dimension_semantics = [#tpu.dimension_semantics<parallel>], iteration_bounds = array<i64: 1>, scalar_prefetch = 0 : i64, scratch_operands = 0 : i64, tpu.core_type = #tpu.core_type<tc>, window_params = [{transform_indices = @transform_0, window_bounds = array<i64: 8, 16>}, {transform_indices = @transform_1, window_bounds = array<i64: 8, 32>}, {transform_indices = @transform_2, window_bounds = array<i64: 8, 1>}, {pipeline_mode = #tpu.pipeline_mode<synchronous>, transform_indices = @transform_3, window_bounds = array<i64: 16, 32>}, {pipeline_mode = #tpu.pipeline_mode<synchronous>, transform_indices = @transform_4, window_bounds = array<i64: 1, 32>}, {pipeline_mode = #tpu.pipeline_mode<synchronous>, transform_indices = @transform_5, window_bounds = array<i64: 32, 32>}, {pipeline_mode = #tpu.pipeline_mode<synchronous>, transform_indices = @transform_6, window_bounds = array<i64: 1, 32>}, {pipeline_mode = #tpu.pipeline_mode<synchronous>, transform_indices = @transform_7, window_bounds = array<i64: 32, 96>}, {pipeline_mode = #tpu.pipeline_mode<synchronous>, transform_indices = @transform_8, window_bounds = array<i64: 32, 96>}, {pipeline_mode = #tpu.pipeline_mode<synchronous>, transform_indices = @transform_9, window_bounds = array<i64: 1, 96>}, {pipeline_mode = #tpu.pipeline_mode<synchronous>, transform_indices = @transform_10, window_bounds = array<i64: 1, 32>}, {pipeline_mode = #tpu.pipeline_mode<synchronous>, transform_indices = @transform_11, window_bounds = array<i64: 1, 32>}, {pipeline_mode = #tpu.pipeline_mode<synchronous>, transform_indices = @transform_12, window_bounds = array<i64: 1, 1>}, {transform_indices = @transform_13, window_bounds = array<i64: 8, 1>}, {transform_indices = @transform_14, window_bounds = array<i64: 8, 32>}]} {
    %c0 = arith.constant 0 : index
    %c0_0 = arith.constant 0 : index
    %0 = vector.load %arg2[%c0, %c0_0] : memref<8x32xf32, #tpu.memory_space<vmem>>, vector<8x32xf32>
    %c0_1 = arith.constant 0 : index
    %c0_2 = arith.constant 0 : index
    %1 = vector.load %arg3[%c0_1, %c0_2] : memref<8x1xf32, #tpu.memory_space<vmem>>, vector<8x1xf32>
    %2 = vector.broadcast %1 : vector<8x1xf32> to vector<8x32xf32>
    %3 = arith.mulf %0, %2 : vector<8x32xf32>
    %c0_3 = arith.constant 0 : index
    %c0_4 = arith.constant 0 : index
    %4 = vector.load %arg1[%c0_3, %c0_4] : memref<8x16xf32, #tpu.memory_space<vmem>>, vector<8x16xf32>
    %5 = arith.truncf %4 : vector<8x16xf32> to vector<8x16xbf16>
    %c0_5 = arith.constant 0 : index
    %c0_6 = arith.constant 0 : index
    %6 = vector.load %arg4[%c0_5, %c0_6] : memref<16x32xbf16, #tpu.memory_space<vmem>>, vector<16x32xbf16>
    %cst = arith.constant dense<0.000000e+00> : vector<8x32xf32>
    %7 = tpu.matmul %5, %6, %cst {dimension_numbers = #tpu.dot_dimension_numbers<[1], [0], [0], [1], [0, 0, 1, 1], [], []>} : vector<8x16xbf16>, vector<16x32xbf16>, vector<8x32xf32> -> vector<8x32xf32>
    %c0_7 = arith.constant 0 : index
    %c0_8 = arith.constant 0 : index
    %8 = vector.load %arg5[%c0_7, %c0_8] : memref<1x32xf32, #tpu.memory_space<vmem>>, vector<1x32xf32>
    %9 = vector.broadcast %8 : vector<1x32xf32> to vector<8x32xf32>
    %10 = arith.addf %7, %9 : vector<8x32xf32>
    %cst_9 = arith.constant 0.000000e+00 : f32
    %11 = vector.broadcast %cst_9 : f32 to vector<8x32xf32>
    %12 = arith.maximumf %10, %11 : vector<8x32xf32>
    %13 = arith.truncf %12 : vector<8x32xf32> to vector<8x32xbf16>
    %c0_10 = arith.constant 0 : index
    %c0_11 = arith.constant 0 : index
    %14 = vector.load %arg6[%c0_10, %c0_11] : memref<32x32xbf16, #tpu.memory_space<vmem>>, vector<32x32xbf16>
    %cst_12 = arith.constant dense<0.000000e+00> : vector<8x32xf32>
    %15 = tpu.matmul %13, %14, %cst_12 {dimension_numbers = #tpu.dot_dimension_numbers<[1], [0], [0], [1], [0, 0, 1, 1], [], []>} : vector<8x32xbf16>, vector<32x32xbf16>, vector<8x32xf32> -> vector<8x32xf32>
    %c0_13 = arith.constant 0 : index
    %c0_14 = arith.constant 0 : index
    %16 = vector.load %arg7[%c0_13, %c0_14] : memref<1x32xf32, #tpu.memory_space<vmem>>, vector<1x32xf32>
    %17 = vector.broadcast %16 : vector<1x32xf32> to vector<8x32xf32>
    %18 = arith.addf %15, %17 : vector<8x32xf32>
    %cst_15 = arith.constant 0.000000e+00 : f32
    %19 = vector.broadcast %cst_15 : f32 to vector<8x32xf32>
    %20 = arith.maximumf %18, %19 : vector<8x32xf32>
    %21 = arith.truncf %20 : vector<8x32xf32> to vector<8x32xbf16>
    %c0_16 = arith.constant 0 : index
    %c0_17 = arith.constant 0 : index
    %22 = vector.load %arg8[%c0_16, %c0_17] : memref<32x96xbf16, #tpu.memory_space<vmem>>, vector<32x96xbf16>
    %cst_18 = arith.constant dense<0.000000e+00> : vector<8x96xf32>
    %23 = tpu.matmul %21, %22, %cst_18 {dimension_numbers = #tpu.dot_dimension_numbers<[1], [0], [0], [1], [0, 0, 1, 1], [], []>} : vector<8x32xbf16>, vector<32x96xbf16>, vector<8x96xf32> -> vector<8x96xf32>
    %24 = arith.truncf %3 : vector<8x32xf32> to vector<8x32xbf16>
    %c0_19 = arith.constant 0 : index
    %c0_20 = arith.constant 0 : index
    %25 = vector.load %arg9[%c0_19, %c0_20] : memref<32x96xbf16, #tpu.memory_space<vmem>>, vector<32x96xbf16>
    %cst_21 = arith.constant dense<0.000000e+00> : vector<8x96xf32>
    %26 = tpu.matmul %24, %25, %cst_21 {dimension_numbers = #tpu.dot_dimension_numbers<[1], [0], [0], [1], [0, 0, 1, 1], [], []>} : vector<8x32xbf16>, vector<32x96xbf16>, vector<8x96xf32> -> vector<8x96xf32>
    %c0_22 = arith.constant 0 : index
    %c0_23 = arith.constant 0 : index
    %27 = vector.load %arg10[%c0_22, %c0_23] : memref<1x96xf32, #tpu.memory_space<vmem>>, vector<1x96xf32>
    %28 = vector.extract_strided_slice %23 {offsets = [0, 0], sizes = [8, 32], strides = [1, 1]} : vector<8x96xf32> to vector<8x32xf32>
    %29 = vector.extract_strided_slice %26 {offsets = [0, 0], sizes = [8, 32], strides = [1, 1]} : vector<8x96xf32> to vector<8x32xf32>
    %30 = arith.addf %28, %29 : vector<8x32xf32>
    %31 = vector.extract_strided_slice %27 {offsets = [0, 0], sizes = [1, 32], strides = [1, 1]} : vector<1x96xf32> to vector<1x32xf32>
    %32 = vector.broadcast %31 : vector<1x32xf32> to vector<8x32xf32>
    %33 = arith.addf %30, %32 : vector<8x32xf32>
    %34 = arith.negf %33 : vector<8x32xf32>
    %35 = math.exp %34 : vector<8x32xf32>
    %cst_24 = arith.constant 1.000000e+00 : f32
    %36 = vector.broadcast %cst_24 : f32 to vector<8x32xf32>
    %37 = arith.addf %36, %35 : vector<8x32xf32>
    %38 = arith.divf %36, %37 : vector<8x32xf32>
    %39 = vector.extract_strided_slice %23 {offsets = [0, 32], sizes = [8, 32], strides = [1, 1]} : vector<8x96xf32> to vector<8x32xf32>
    %40 = vector.extract_strided_slice %26 {offsets = [0, 32], sizes = [8, 32], strides = [1, 1]} : vector<8x96xf32> to vector<8x32xf32>
    %41 = arith.addf %39, %40 : vector<8x32xf32>
    %42 = vector.extract_strided_slice %27 {offsets = [0, 32], sizes = [1, 32], strides = [1, 1]} : vector<1x96xf32> to vector<1x32xf32>
    %43 = vector.broadcast %42 : vector<1x32xf32> to vector<8x32xf32>
    %44 = arith.addf %41, %43 : vector<8x32xf32>
    %45 = arith.negf %44 : vector<8x32xf32>
    %46 = math.exp %45 : vector<8x32xf32>
    %cst_25 = arith.constant 1.000000e+00 : f32
    %47 = vector.broadcast %cst_25 : f32 to vector<8x32xf32>
    %48 = arith.addf %47, %46 : vector<8x32xf32>
    %49 = arith.divf %47, %48 : vector<8x32xf32>
    %50 = vector.extract_strided_slice %23 {offsets = [0, 64], sizes = [8, 32], strides = [1, 1]} : vector<8x96xf32> to vector<8x32xf32>
    %51 = vector.extract_strided_slice %27 {offsets = [0, 64], sizes = [1, 32], strides = [1, 1]} : vector<1x96xf32> to vector<1x32xf32>
    %52 = vector.broadcast %51 : vector<1x32xf32> to vector<8x32xf32>
    %53 = arith.addf %50, %52 : vector<8x32xf32>
    %54 = vector.extract_strided_slice %26 {offsets = [0, 64], sizes = [8, 32], strides = [1, 1]} : vector<8x96xf32> to vector<8x32xf32>
    %c0_26 = arith.constant 0 : index
    %c0_27 = arith.constant 0 : index
    %55 = vector.load %arg11[%c0_26, %c0_27] : memref<1x32xf32, #tpu.memory_space<vmem>>, vector<1x32xf32>
    %56 = vector.broadcast %55 : vector<1x32xf32> to vector<8x32xf32>
    %57 = arith.addf %54, %56 : vector<8x32xf32>
    %58 = arith.mulf %38, %57 : vector<8x32xf32>
    %59 = arith.addf %53, %58 : vector<8x32xf32>
    %60 = math.tanh %59 : vector<8x32xf32>
    %cst_28 = arith.constant 1.000000e+00 : f32
    %61 = vector.broadcast %cst_28 : f32 to vector<8x32xf32>
    %62 = arith.subf %61, %49 : vector<8x32xf32>
    %63 = arith.mulf %62, %60 : vector<8x32xf32>
    %64 = arith.mulf %49, %3 : vector<8x32xf32>
    %65 = arith.addf %63, %64 : vector<8x32xf32>
    %c0_29 = arith.constant 0 : index
    %c0_30 = arith.constant 0 : index
    %66 = vector.load %arg12[%c0_29, %c0_30] : memref<1x32xf32, #tpu.memory_space<vmem>>, vector<1x32xf32>
    %67 = vector.broadcast %66 : vector<1x32xf32> to vector<8x32xf32>
    %68 = arith.mulf %65, %67 : vector<8x32xf32>
    %cst_31 = arith.constant dense<0.000000e+00> : vector<8xf32>
    %69 = vector.multi_reduction <add>, %68, %cst_31 [1] : vector<8x32xf32> to vector<8xf32>
    %70 = vector.shape_cast %69 : vector<8xf32> to vector<8x1xf32>
    %c0_32 = arith.constant 0 : index
    %c0_33 = arith.constant 0 : index
    %71 = vector.load %arg13[%c0_32, %c0_33] : memref<1x1xf32, #tpu.memory_space<vmem>>, vector<1x1xf32>
    %72 = vector.broadcast %71 : vector<1x1xf32> to vector<8x1xf32>
    %73 = arith.addf %70, %72 : vector<8x1xf32>
    %c0_34 = arith.constant 0 : index
    %c0_35 = arith.constant 0 : index
    %74 = vector.load %arg14[%c0_34, %c0_35] : memref<8x1xf32, #tpu.memory_space<vmem>>, vector<8x1xf32>
    tpu.vector_store %arg14[%c0_34, %c0_35], %73 {strides = array<i32>} : memref<8x1xf32, #tpu.memory_space<vmem>>, vector<8x1xf32>,
    %c0_36 = arith.constant 0 : index
    %c0_37 = arith.constant 0 : index
    %75 = vector.load %arg15[%c0_36, %c0_37] : memref<8x32xf32, #tpu.memory_space<vmem>>, vector<8x32xf32>
    tpu.vector_store %arg15[%c0_36, %c0_37], %65 {strides = array<i32>} : memref<8x32xf32, #tpu.memory_space<vmem>>, vector<8x32xf32>,
    return
  }
  func.func @transform_0(%arg0: i32) -> (i32, i32) {
    %c0_i32 = arith.constant 0 : i32
    %c0_i32_0 = arith.constant 0 : i32
    return %arg0, %c0_i32 : i32, i32
  }
  func.func @transform_1(%arg0: i32) -> (i32, i32) {
    %c0_i32 = arith.constant 0 : i32
    %c0_i32_0 = arith.constant 0 : i32
    return %arg0, %c0_i32 : i32, i32
  }
  func.func @transform_2(%arg0: i32) -> (i32, i32) {
    %c0_i32 = arith.constant 0 : i32
    %c0_i32_0 = arith.constant 0 : i32
    return %arg0, %c0_i32 : i32, i32
  }
  func.func @transform_3(%arg0: i32) -> (i32, i32) {
    %c0_i32 = arith.constant 0 : i32
    %c0_i32_0 = arith.constant 0 : i32
    %c0_i32_1 = arith.constant 0 : i32
    return %c0_i32, %c0_i32_0 : i32, i32
  }
  func.func @transform_4(%arg0: i32) -> (i32, i32) {
    %c0_i32 = arith.constant 0 : i32
    %c0_i32_0 = arith.constant 0 : i32
    %c0_i32_1 = arith.constant 0 : i32
    return %c0_i32, %c0_i32_0 : i32, i32
  }
  func.func @transform_5(%arg0: i32) -> (i32, i32) {
    %c0_i32 = arith.constant 0 : i32
    %c0_i32_0 = arith.constant 0 : i32
    %c0_i32_1 = arith.constant 0 : i32
    return %c0_i32, %c0_i32_0 : i32, i32
  }
  func.func @transform_6(%arg0: i32) -> (i32, i32) {
    %c0_i32 = arith.constant 0 : i32
    %c0_i32_0 = arith.constant 0 : i32
    %c0_i32_1 = arith.constant 0 : i32
    return %c0_i32, %c0_i32_0 : i32, i32
  }
  func.func @transform_7(%arg0: i32) -> (i32, i32) {
    %c0_i32 = arith.constant 0 : i32
    %c0_i32_0 = arith.constant 0 : i32
    %c0_i32_1 = arith.constant 0 : i32
    return %c0_i32, %c0_i32_0 : i32, i32
  }
  func.func @transform_8(%arg0: i32) -> (i32, i32) {
    %c0_i32 = arith.constant 0 : i32
    %c0_i32_0 = arith.constant 0 : i32
    %c0_i32_1 = arith.constant 0 : i32
    return %c0_i32, %c0_i32_0 : i32, i32
  }
  func.func @transform_9(%arg0: i32) -> (i32, i32) {
    %c0_i32 = arith.constant 0 : i32
    %c0_i32_0 = arith.constant 0 : i32
    %c0_i32_1 = arith.constant 0 : i32
    return %c0_i32, %c0_i32_0 : i32, i32
  }
  func.func @transform_10(%arg0: i32) -> (i32, i32) {
    %c0_i32 = arith.constant 0 : i32
    %c0_i32_0 = arith.constant 0 : i32
    %c0_i32_1 = arith.constant 0 : i32
    return %c0_i32, %c0_i32_0 : i32, i32
  }
  func.func @transform_11(%arg0: i32) -> (i32, i32) {
    %c0_i32 = arith.constant 0 : i32
    %c0_i32_0 = arith.constant 0 : i32
    %c0_i32_1 = arith.constant 0 : i32
    return %c0_i32, %c0_i32_0 : i32, i32
  }
  func.func @transform_12(%arg0: i32) -> (i32, i32) {
    %c0_i32 = arith.constant 0 : i32
    %c0_i32_0 = arith.constant 0 : i32
    %c0_i32_1 = arith.constant 0 : i32
    return %c0_i32, %c0_i32_0 : i32, i32
  }
  func.func @transform_13(%arg0: i32) -> (i32, i32) {
    %c0_i32 = arith.constant 0 : i32
    %c0_i32_0 = arith.constant 0 : i32
    return %arg0, %c0_i32 : i32, i32
  }
  func.func @transform_14(%arg0: i32) -> (i32, i32) {
    %c0_i32 = arith.constant 0 : i32
    %c0_i32_0 = arith.constant 0 : i32
    return %arg0, %c0_i32 : i32, i32
  }
}

</mosaic_0001>

<bundles_post_ra>
// kernel: critic_forward.1
= control target key start
LH: loop header
LB: loop body
LE: loop exit
PB: predicated region body
PF: predicated region fallthrough
CT: control target
= control target key end

     0   :  { %s774_s0 = inlined_call_operand.vmem [shape: f32[8,16], index: 0, kind: input, shape index: {}]   ;;  %s775_s1 = inlined_call_operand.vmem [shape: f32[8,32], index: 1, kind: input, shape index: {}, may-alias: {1,14}]   ;;  %s776_s2 = inlined_call_operand.vmem [shape: f32[8,1], index: 2, kind: input, shape index: {}]   ;;  %s777_s3 = inlined_call_operand.vmem [shape: bf16[16,32], index: 3, kind: input, shape index: {}]   ;;  %s778_s4 = inlined_call_operand.vmem [shape: f32[1,32], index: 4, kind: input, shape index: {}]   ;;  %s779_s5 = inlined_call_operand.vmem [shape: bf16[32,32], index: 5, kind: input, shape index: {}]   ;;  %s780_s6 = inlined_call_operand.vmem [shape: f32[1,32], index: 6, kind: input, shape index: {}]   ;;  %s781_s7 = inlined_call_operand.hbm [shape: bf16[32,96], index: 7, kind: input, shape index: {}]   ;;  %s782_s8 = inlined_call_operand.hbm [shape: bf16[32,96], index: 8, kind: input, shape index: {}]   ;;  %s783_s9 = inlined_call_operand.vmem [shape: f32[1,96], index: 9, kind: input, shape index: {}]   ;;  %s784_s10 = inlined_call_operand.vmem [shape: f32[1,32], index: 10, kind: input, shape index: {}]   ;;  %s785_s11 = inlined_call_operand.hbm [shape: f32[1,32], index: 11, kind: input, shape index: {}]   ;;  %s786_s12 = inlined_call_operand.<no memory space> [shape: f32[1,1], index: 12, kind: input, shape index: {}]   ;;  %s787_s13 = inlined_call_operand.vmem [shape: f32[8,1], index: 13, kind: output, shape index: {0}]   ;;  %s788_s14 = inlined_call_operand.vmem [shape: f32[8,32], index: 14, kind: output, shape index: {1}, may-alias: {1,14}]  }
   0x1   :  { %v20_v0 = vstv %s786_s12 }
   0x2   :  { %21 = vst [vmem:[#allocation2] sm:$0x1] %v20_v0 }
   0x3   :  { %22 = vsyncpa [#allocation4], 0 }
   0x4   :  { %23 = vsyncpa [#allocation6], 0  ;;  %s591_s15 = smov [#allocation5]   ;;  %s592_s17 = smov [#allocation3]  }
   0x5   :  { %s55_s16 = sshll.u32 %s591_s15, 4  ;;  %s43_s18 = sshll.u32 %s592_s17, 4  ;;  %s56_s16 = int_to_ptr.vmem [resolvable:$true] %s55_s16  ;;  %s679_s18 = int_to_ptr.vmem [resolvable:$true] %s43_s18 }
   0x6   :  { %s521_s21 = scalar_lea.hbm %s782_s8, 256 }
   0x7   :  { %p522_p0 = scmp.ne.s32.totalorder %s782_s8, %s521_s21  ;;  %p525_p1 = scmp.lt.u32.totalorder %s521_s21, %s782_s8 }
   0x9   :  { %p527_p2 = pnand %p525_p1, %p522_p0 }
   0xb   :  { %530 = shalt.err (!%p527_p2)
}
   0xc   :  { %s531_s25 = scalar_lea.vmem %s56_s16, 256  ;;  %p536_p4 = scmp.lt.s32.totalorder %s56_s16, %s56_s16 }
   0xd   :  { %p532_p3 = scmp.ne.s32.totalorder %s56_s16, %s531_s25  ;;  %p537_p5 = scmp.lt.s32.totalorder %s531_s25, %s531_s25 }
   0xf   :  { %p538_p6 = por %p537_p5, %p536_p4 }
  0x11   :  { %p539_p7 = pnand %p538_p6, %p532_p3 }
  0x13   :  { %542 = shalt.err (!%p539_p7)
}
  0x14   :  { %s593_s26 = smov 64   ;;  %s594_s27 = smov 4  }
  0x15   :  { %61 = dma.hbm_to_vmem [thread:$0]  %s782_s8, 256, %s56_s16, [#allocation6], %s593_s26, %s593_s26, %s594_s27  }
  0x16   :  { %s543_s17 = scalar_lea.hbm %s781_s7, 256 }
  0x17   :  { %p544_p8 = scmp.ne.s32.totalorder %s781_s7, %s543_s17  ;;  %p547_p9 = scmp.lt.u32.totalorder %s543_s17, %s781_s7 }
  0x19   :  { %p549_p10 = pnand %p547_p9, %p544_p8 }
  0x1b   :  { %552 = shalt.err (!%p549_p10)
}
  0x1c   :  { %s553_s23 = scalar_lea.vmem %s679_s18, 256  ;;  %p558_p12 = scmp.lt.s32.totalorder %s679_s18, %s679_s18 }
  0x1d   :  { %p554_p11 = scmp.ne.s32.totalorder %s679_s18, %s553_s23  ;;  %p559_p13 = scmp.lt.s32.totalorder %s553_s23, %s553_s23 }
  0x1f   :  { %p560_p0 = por %p559_p13, %p558_p12 }
  0x21   :  { %p561_p1 = pnand %p560_p0, %p554_p11 }
  0x23   :  { %564 = shalt.err (!%p561_p1)
}
  0x24   :  { %49 = dma.hbm_to_vmem [thread:$0]  %s781_s7, 256, %s679_s18, [#allocation4], %s593_s26, %s593_s26, %s594_s27  }
  0x25   :  { %s595_s24 = smov [#allocation7]   ;;  %s565_s29 = scalar_lea.hbm %s785_s11, 16 }
  0x26   :  { %s72_s12 = sshll.u32 %s595_s24, 4  ;;  %p566_p2 = scmp.ne.s32.totalorder %s785_s11, %s565_s29  ;;  %s73_s12 = int_to_ptr.vmem [resolvable:$true] %s72_s12 }
  0x27   :  { %p569_p3 = scmp.lt.u32.totalorder %s565_s29, %s785_s11 }
  0x29   :  { %p571_p4 = pnand %p569_p3, %p566_p2 }
  0x2b   :  { %574 = shalt.err (!%p571_p4)
}
  0x2c   :  { %s575_s20 = scalar_lea.vmem %s73_s12, 16  ;;  %s579_s7 = scalar_lea.vmem %s73_s12, 32 }
  0x2d   :  { %p576_p5 = scmp.ne.s32.totalorder %s73_s12, %s575_s20  ;;  %p580_p6 = scmp.lt.s32.totalorder %s73_s12, %s73_s12 }
  0x2e   :  { %p581_p7 = scmp.lt.s32.totalorder %s579_s7, %s575_s20 }
  0x30   :  { %p582_p8 = por %p581_p7, %p580_p6 }
  0x32   :  { %p583_p9 = pnand %p582_p8, %p576_p5 }
  0x34   :  { %586 = shalt.err (!%p583_p9)
}
  0x35   :  { %75 = dma.hbm_to_vmem [thread:$0]  %s785_s11, 16, %s73_s12, [#allocation6]  }
  0x36   :  { %587 = dma.done.wait [#allocation4], 256  }
  0x37   :  { %588 = vsyncadd [#allocation4], 4294967040 }
  0x38   :  { %589 = dma.done.wait [#allocation6], 272  }
  0x39   :  { %590 = vsyncadd [#allocation6], 4294967024  ;;  %v596_v1 = vmov 0.0   ;;  %vm597_vm0 = vmmov 0   ;;  %v508_v2 = vld [vmem:[%s777_s3] sm:$0xff]   ;;  %vm113_vm1 = vcmask 130048  }
  0x3a   :  { %467 = vmatprep.subr.bf16.mxu0 %v596_v1  ;;  %469 = vmatprep.mubr.msk.bf16.mxu0 %vm597_vm0, %v596_v1  ;;  %v96_v3 = vld [vmem:[%s774_s0] sm:$0xff]  ;;  %v598_v6 = vmov 0   ;;  %v510_v8 = vld [vmem:[%s779_s5 + $0x8] sm:$0xff]   ;;  %vm182_vm2 = vcmask 261120   ;;  %v511_v17 = vld [vmem:[#allocation5] sm:$0xff]   ;;  %vm421_vm3 = vcmask 7168  }
  0x3b   :  { %473 = vmatprep.subr.bf16.mxu1 %v596_v1  ;;  %477 = vmatprep.mubr.msk.bf16.mxu1 %vm597_vm0, %v596_v1  ;;  %v97_v4 = vpack.c.bf16 %v96_v3, %v96_v3  ;;  %v509_v5 = vld [vmem:[%s779_s5] sm:$0xff]   ;;  %v514_v24 = vld [vmem:[#allocation3 + $0x8] sm:$0xff]  }
  0x3c   :  { %468 = vmatpush3.bf16.msra.mxu0 %v508_v2  ;;  %474 = vmatpush3.bf16.msra.mxu1 %v509_v5  ;;  %v89_v7 = vld [vmem:[%s776_s2] sm:$0xff] }
  0x3d   :  { %481 = vmatprep.subr.bf16.mxu0 %v596_v1  ;;  %475 = vmatprep.subr.bf16.mxu1 %v596_v1  ;;  %v513_v9 = vld [vmem:[#allocation3] sm:$0xff]   ;;  %v438_v10 = vld [vmem:[%s778_s4] ss:$0 sm:$0xff] }
  0x3e   :  { %507 = vset.pattern.permute.xlu0 %v598_v6  ;;  %v88_v19 = vld [vmem:[%s775_s1] sm:$0xff] }
  0x3f   :  { %470 = vmatmul.mubr.msk.bf16.vlgmr.msra.gmra.mrb[0].mxu0 %vm113_vm1, %v97_v4  ;;  %92 = vperm.xlu0 %507, %v89_v7   ;;  %v512_v22 = vld [vmem:[#allocation5 + $0x8] sm:$0xff]   ;;  %v454_v57 = vld [vmem:[#allocation7] ss:$0 sm:$0xff] }
  0x40   :  { %485 = vmatprep.mubr.msk.bf16.mxu0 %vm597_vm0, %v596_v1  ;;  %476 = vmatpush3.bf16.msra.mxu1 %v510_v8  ;;  %v453_v25 = vld [vmem:[%s784_s10] ss:$0 sm:$0xff] }
  0x41   :  { %489 = vmatprep.subr.bf16.mxu1 %v596_v1  ;;  %482 = vmatpush3.bf16.msra.mxu0 %v513_v9  ;;  %v441_v26 = vld [vmem:[%s780_s6] ss:$0 sm:$0xff]  ;;  %s599_s6 = smov 32  }
  0x42   :  { %483 = vmatprep.subr.bf16.mxu0 %v596_v1  ;;  %v451_v40 = vld [vmem:[%s783_s9] ss:$0 sm:$0xff]  ;;  %s600_s9 = smov 96  }
  0x43   :  { %369 = vrot.lane.b32.xlu0 %v453_v25, %s593_s26  ;;  %v455_v5 = vld [vmem:[#allocation2] ss:$0 sm:$0xff] }
  0x45   :  { %484 = vmatpush3.bf16.msra.mxu0 %v514_v24 }
  0xbe   :  { %v93_v18 = vpop.permute.xlu0 %92 }
  0xbf   :  { %v95_v21 = vmul.f32 %v93_v18, %v88_v19 }
  0xc1   :  { %v287_v23 = vpack.c.bf16 %v95_v21, %v95_v21 }
  0xc2   :  { %v370_v34 = vpop.permute.xlu0 %369 }
 0x112   :  { %v151_v11 = vpop.f32.mrb[0].mxu0 }
 0x113   :  { %v152_v12 = vadd.f32 %v438_v10, %v151_v11  ;;  %v471_v13 = vpop.f32.mrb[1].mxu0 }
 0x114   :  { %v154_v14 = vpop.f32.mrb[2].mxu0 }
 0x115   :  { %v157_v15 = vmax.f32 %v152_v12, 0.0  ;;  %v472_v16 = vpop.f32.mrb[3].mxu0 }
 0x117   :  { %v158_v20 = vpack.c.bf16 %v157_v15, %v157_v15 }
 0x119   :  { %478 = vmatmul.mubr.msk.bf16.vlgmr.msra.gmra.mrb[0].mxu1 %vm182_vm2, %v158_v20 }
 0x11a   :  { %490 = vmatpush3.bf16.msra.mxu1 %v511_v17  ;;  %493 = vmatprep.mubr.msk.bf16.mxu1 %vm597_vm0, %v596_v1 }
 0x11b   :  { %491 = vmatprep.subr.bf16.mxu1 %v596_v1 }
 0x11e   :  { %492 = vmatpush3.bf16.msra.mxu1 %v512_v22 }
 0x121   :  { %494 = vmatmul.mubr.msk.bf16.vlgmr.msra.gmra.mrb[4].mxu1 %vm182_vm2, %v287_v23 }
 0x1ec   :  { %v220_v27 = vpop.f32.mrb[0].mxu1 }
 0x1ed   :  { %v221_v28 = vadd.f32 %v441_v26, %v220_v27  ;;  %v479_v29 = vpop.f32.mrb[1].mxu1 }
 0x1ee   :  { %v223_v30 = vpop.f32.mrb[2].mxu1 }
 0x1ef   :  { %v226_v31 = vmax.f32 %v221_v28, 0.0  ;;  %v480_v32 = vpop.f32.mrb[3].mxu1 }
 0x1f1   :  { %v227_v33 = vpack.c.bf16 %v226_v31, %v226_v31 }
 0x1f3   :  { %486 = vmatmul.mubr.msk.bf16.vlgmr.msra.gmra.mrb[4].mxu0 %vm182_vm2, %v227_v33 }
 0x1f4   :  { %v341_v35 = vpop.f32.mrb[4].mxu1 }
 0x1f5   :  { %v495_v36 = vpop.f32.mrb[5].mxu1  ;;  %v372_v37 = vadd.f32 %v370_v34, %v341_v35 }
 0x1f6   :  { %v344_v38 = vpop.f32.mrb[6].mxu1 }
 0x1f7   :  { %v496_v39 = vpop.f32.mrb[7].mxu1  ;;  %374 = vrot.lane.b32.xlu1 %v372_v37, %s593_s26 }
 0x269   :  { %v375_v51 = vpop.permute.xlu1 %374 }
 0x2c6   :  { %v281_v41 = vpop.f32.mrb[4].mxu0 }
 0x2c7   :  { %v348_v42 = vadd.f32 %v341_v35, %v281_v41  ;;  %v362_v43 = vadd.f32 %v451_v40, %v281_v41  ;;  %v487_v44 = vpop.f32.mrb[5].mxu0 }
 0x2c8   :  { %v284_v45 = vpop.f32.mrb[6].mxu0 }
 0x2c9   :  { %v355_v46 = vadd.f32 %v451_v40, %v348_v42  ;;  %v488_v47 = vpop.f32.mrb[7].mxu0 }
 0x2cb   :  { %v452_v48 = vmul.f32 -1.442695, %v355_v46 }
 0x2cd   :  { %515 = vpow2.f32 %v452_v48 }
 0x2d7   :  { %v516_v49 = vpop.eup %515 }
 0x2d8   :  { %v359_v50 = vadd.f32 1.0, %v516_v49 }
 0x2da   :  { %517 = vrcp.f32 %v359_v50 }
 0x2e4   :  { %v518_v52 = vpop.eup %517 }
 0x2e5   :  { %v377_v53 = vmul.f32 %v518_v52, %v375_v51  ;;  %v384_v59 = vsub.f32 1.0, %v518_v52 }
 0x2e7   :  { %379 = vrot.lane.b32.xlu1 %v377_v53, %s593_s26 }
 0x2eb   :  { %391 = vrot.lane.b32.xlu1 %v95_v21, %s599_s6 }
 0x359   :  { %v380_v54 = vpop.permute.xlu1 %379 }
 0x35a   :  { %v382_v55 = vadd.f32 %v380_v54, %v362_v43 }
 0x35c   :  { %519 = vtanh.f32 %v382_v55 }
 0x35d   :  { %v392_v58 = vpop.permute.xlu1 %391 }
 0x35e   :  { %v394_v61 = vmul.f32 %v518_v52, %v392_v58 }
 0x366   :  { %v520_v56 = vpop.eup %519 }
 0x367   :  { %386 = vrot.lane.b32.xlu0 %v520_v56, %s600_s9 }
 0x36b   :  { %402 = vrot.lane.b32.xlu0 %v454_v57, %s599_s6 }
 0x3d9   :  { %v387_v60 = vpop.permute.xlu0 %386 }
 0x3da   :  { %v389_v62 = vmul.f32 %v387_v60, %v384_v59 }
 0x3dc   :  { %v395_v63 = vadd.f32 %v394_v61, %v389_v62 }
 0x3dd   :  { %v403_v0 = vpop.permute.xlu0 %402 }
 0x3de   :  { %v405_v1 = vmul.f32 %v403_v0, %v395_v63 }
 0x3e0   :  { %407 = vrot.lane.b32.xlu1 %v405_v1, %s600_s9 }
 0x3e4   :  { %424 = vrot.lane.b32.xlu1 %v395_v63, %s600_s9 }
 0x452   :  { %v408_v2 = vpop.permute.xlu1 %407 }
 0x453   :  { %v410_v3 = vsel %vm182_vm2, %v408_v2, 0.0 }
 0x454   :  { %411 = vadd.xlane.f32.xlu0 %v410_v3 }
 0x456   :  { %v425_v4 = vpop.permute.xlu1 %424 }
 0x457   :  { %427 = vst.msk [vmem:[%s788_s14] sm:$0xff] %vm182_vm2, %v425_v4 }
 0x4e1   :  { %v412_v6 = vpop.xlane.xlu0 %411 }
 0x4e2   :  { %v420_v7 = vadd.f32 %v455_v5, %v412_v6 }
 0x4e4   :  { %422 = vst.msk [vmem:[%s787_s13] sm:$0xff] %vm421_vm3, %v420_v7 }
 0x4e5   :  { %436 = vsyncpa [#allocation4], 1 }
 0x4e6   :  { %437 = vsyncpa [#allocation6], 1 }

</bundles_post_ra>
